<compile_context>
chip_gen: v7x
topology: tpu7x:2x2x1
jax: 0.10.0
libtpu: 0.0.40
codegen_flags: <defaults>
</compile_context>

<pallas_src>
import jax
import jax.numpy as jnp
from jax import lax
from jax.experimental import pallas as pl
from jax.experimental.pallas import tpu as pltpu


def _minpool_kernel(seq_ref, x_ref, o_ref, acc_ref):
    # seq_ref: (TB, 1, 1) int32   -- per-row valid prefix length
    # x_ref  : (TB, TS, TD)       -- one (batch-tile, S-chunk, D-tile) block
    # o_ref  : (TB, TD)           -- pooled output tile (resident across S axis)
    # acc_ref: (TB, TD) scratch   -- running min accumulator (input dtype)
    si = pl.program_id(2)

    @pl.when(si == 0)
    def _init():
        acc_ref[...] = jnp.full_like(acc_ref, jnp.inf)

    x = x_ref[...]                                   # (TB, TS, TD)
    tb, ts = x.shape[0], x.shape[1]

    # Absolute sequence position of each row in this S-chunk (built once).
    pos = si * ts + lax.broadcasted_iota(jnp.int32, (tb, ts, 1), 1)   # (TB, TS, 1)
    valid = pos < seq_ref[...]                                        # (TB, TS, 1)

    inf = jnp.asarray(jnp.inf, dtype=x.dtype)
    masked = jnp.where(valid, x, inf)                # broadcast over TD lanes
    acc_ref[...] = jnp.minimum(acc_ref[...], jnp.min(masked, axis=1))

    @pl.when(si == pl.num_programs(2) - 1)
    def _finalize():
        o_ref[...] = jnp.clip(acc_ref[...], 1e-9, 1e9).astype(o_ref.dtype)


def _round_up(a, m):
    return (a + m - 1) // m * m


def min_pooling_with_mask(x, mask, *, tb=8, td_max=512, ts_max=256):
    """x: (B, S, D) float, mask: (B, S) of {0,1} (or None). Returns (B, D)."""
    B, S, D = x.shape

    if mask is None:
        seq_len = jnp.full((B,), S, dtype=jnp.int32)
    else:
        seq_len = jnp.sum(mask.astype(jnp.int32), axis=1)
    seq_len = seq_len.reshape(B, 1, 1)

    # ---- tile sizes (lane-dense D tiles, sublane-aligned S chunks) ----
    Bp = _round_up(B, tb)
    d128 = _round_up(D, 128)
    td = d128 if d128 <= td_max else td_max
    Dp = _round_up(D, td)
    s8 = _round_up(S, 8)
    ts = s8 if s8 <= ts_max else ts_max
    Sp = _round_up(S, ts)

    # Zero-pad to tile multiples; padded rows get seq_len=0 (-> 1e9, discarded),
    # padded S positions are masked by the prefix test, padded D cols are sliced off.
    if (Bp, Sp, Dp) != (B, S, D):
        x = jnp.pad(x, ((0, Bp - B), (0, Sp - S), (0, Dp - D)))
    if Bp != B:
        seq_len = jnp.pad(seq_len, ((0, Bp - B), (0, 0), (0, 0)))

    grid = (Bp // tb, Dp // td, Sp // ts)

    out = pl.pallas_call(
        _minpool_kernel,
        out_shape=jax.ShapeDtypeStruct((Bp, Dp), x.dtype),
        grid_spec=pltpu.PrefetchScalarGridSpec(
            num_scalar_prefetch=0,
            grid=grid,
            in_specs=[
                pl.BlockSpec((tb, 1, 1), lambda bi, di, si: (bi, 0, 0)),
                pl.BlockSpec((tb, ts, td), lambda bi, di, si: (bi, si, di)),
            ],
            out_specs=pl.BlockSpec((tb, td), lambda bi, di, si: (bi, di)),
            scratch_shapes=[pltpu.VMEM((tb, td), x.dtype)],
        ),
        compiler_params=pltpu.CompilerParams(
            dimension_semantics=("parallel", "parallel", "arbitrary"),
            vmem_limit_bytes=32 * 1024 * 1024,
        ),
    )(seq_len, x)

    return out[:B, :D]


def _reference(x, mask):
    # Pure-JAX reference mirroring the PyTorch loop (prefix semantics).
    seq_len = jnp.sum(mask.astype(jnp.int32), axis=1)           # (B,)
    S = x.shape[1]
    pos = jnp.arange(S)[None, :, None]                          # (1, S, 1)
    valid = pos < seq_len[:, None, None]                        # (B, S, 1)
    masked = jnp.where(valid, x, jnp.inf)
    mn = jnp.min(masked, axis=1)                                # (B, D)
    return jnp.clip(mn, 1e-9, 1e9)


if __name__ == "__main__":
    key = jax.random.PRNGKey(0)
    B, S, D = 6, 40, 200

    x = jax.random.normal(key, (B, S, D), dtype=jnp.float32) * 3.0 + 0.5

    # Deterministic prefix masks (valid lengths per batch element, all >= 1).
    lengths = jnp.array([S, 33, 17, 8, 2, 1], dtype=jnp.int32)
    mask = (jnp.arange(S)[None, :] < lengths[:, None]).astype(jnp.float32)  # (B, S)

    # Small tile overrides so the test exercises batch padding, multiple D tiles
    # and a multi-step S reduction (grid = (1, 2, 3) here).
    out = min_pooling_with_mask(x, mask, tb=8, td_max=128, ts_max=16)
    out = jax.block_until_ready(out)

    ref = _reference(x, mask)
    assert out.shape == (B, D)
    assert jnp.allclose(out, ref, atol=1e-6, rtol=1e-6), "mismatch vs reference"

    print("KERNEL_OK")
</pallas_src>

<mosaic_0001>
module attributes {stable_mosaic.version = 11 : i64} {
  func.func @_minpool_kernel(%arg0: i32, %arg1: i32, %arg2: i32, %arg3: memref<8x1x1xi32, #tpu.memory_space<vmem>>, %arg4: memref<8x16x128xf32, #tpu.memory_space<vmem>>, %arg5: memref<8x128xf32, #tpu.memory_space<vmem>>, %arg6: memref<8x128xf32, #tpu.memory_space<vmem>>) attributes {dimension_semantics = [#tpu.dimension_semantics<parallel>, #tpu.dimension_semantics<parallel>, #tpu.dimension_semantics<arbitrary>], iteration_bounds = array<i64: 1, 2, 3>, scalar_prefetch = 0 : i64, scratch_operands = 1 : i64, tpu.core_type = #tpu.core_type<tc>, window_params = [{transform_indices = @transform_0, window_bounds = array<i64: 8, 1, 1>}, {transform_indices = @transform_1, window_bounds = array<i64: 8, 16, 128>}, {transform_indices = @transform_2, window_bounds = array<i64: 8, 128>}]} {
    %c0_i32 = arith.constant 0 : i32
    %0 = arith.cmpi eq, %arg2, %c0_i32 : i32
    %1 = arith.extui %0 : i1 to i32
    %c0_i32_0 = arith.constant 0 : i32
    %2 = arith.cmpi ne, %1, %c0_i32_0 : i32
    scf.if %2 {
      %cst_12 = arith.constant 0x7F800000 : f32
      %22 = vector.broadcast %cst_12 : f32 to vector<8x128xf32>
      %c0_13 = arith.constant 0 : index
      %c0_14 = arith.constant 0 : index
      %23 = vector.load %arg6[%c0_13, %c0_14] : memref<8x128xf32, #tpu.memory_space<vmem>>, vector<8x128xf32>
      tpu.vector_store %arg6[%c0_13, %c0_14], %22 {strides = array<i32>} : memref<8x128xf32, #tpu.memory_space<vmem>>, vector<8x128xf32>,
    } else {
    }
    %c0 = arith.constant 0 : index
    %c0_1 = arith.constant 0 : index
    %c0_2 = arith.constant 0 : index
    %3 = vector.load %arg4[%c0, %c0_1, %c0_2] : memref<8x16x128xf32, #tpu.memory_space<vmem>>, vector<8x16x128xf32>
    %c16_i32 = arith.constant 16 : i32
    %4 = arith.muli %arg2, %c16_i32 : i32
    %5 = tpu.iota {dimensions = array<i32: 1>} : vector<8x16x1xi32>
    %6 = vector.broadcast %4 : i32 to vector<8x16x1xi32>
    %7 = arith.addi %6, %5 : vector<8x16x1xi32>
    %c0_3 = arith.constant 0 : index
    %c0_4 = arith.constant 0 : index
    %c0_5 = arith.constant 0 : index
    %8 = vector.load %arg3[%c0_3, %c0_4, %c0_5] : memref<8x1x1xi32, #tpu.memory_space<vmem>>, vector<8x1x1xi32>
    %9 = vector.broadcast %8 : vector<8x1x1xi32> to vector<8x16x1xi32>
    %10 = arith.cmpi slt, %7, %9 : vector<8x16x1xi32>
    %cst = arith.constant 0x7F800000 : f32
    %11 = vector.shape_cast %10 : vector<8x16x1xi1> to vector<8x16x1xi1>
    %12 = vector.broadcast %11 : vector<8x16x1xi1> to vector<8x16x128xi1>
    %13 = vector.broadcast %cst : f32 to vector<8x16x128xf32>
    %14 = arith.select %12, %3, %13 : vector<8x16x128xi1>, vector<8x16x128xf32>
    %c0_6 = arith.constant 0 : index
    %c0_7 = arith.constant 0 : index
    %15 = vector.load %arg6[%c0_6, %c0_7] : memref<8x128xf32, #tpu.memory_space<vmem>>, vector<8x128xf32>
    %cst_8 = arith.constant dense<0x7F800000> : vector<8x128xf32>
    %16 = vector.multi_reduction <minimumf>, %14, %cst_8 [1] : vector<8x16x128xf32> to vector<8x128xf32>
    %17 = arith.minimumf %15, %16 : vector<8x128xf32>
    %c0_9 = arith.constant 0 : index
    %c0_10 = arith.constant 0 : index
    %18 = vector.load %arg6[%c0_9, %c0_10] : memref<8x128xf32, #tpu.memory_space<vmem>>, vector<8x128xf32>
    tpu.vector_store %arg6[%c0_9, %c0_10], %17 {strides = array<i32>} : memref<8x128xf32, #tpu.memory_space<vmem>>, vector<8x128xf32>,
    %c2_i32 = arith.constant 2 : i32
    %19 = arith.cmpi eq, %arg2, %c2_i32 : i32
    %20 = arith.extui %19 : i1 to i32
    %c0_i32_11 = arith.constant 0 : i32
    %21 = arith.cmpi ne, %20, %c0_i32_11 : i32
    scf.if %21 {
      %c0_12 = arith.constant 0 : index
      %c0_13 = arith.constant 0 : index
      %22 = vector.load %arg6[%c0_12, %c0_13] : memref<8x128xf32, #tpu.memory_space<vmem>>, vector<8x128xf32>
      %cst_14 = arith.constant 9.99999971E-10 : f32
      %cst_15 = arith.constant 1.000000e+09 : f32
      %23 = vector.broadcast %cst_14 : f32 to vector<8x128xf32>
      %24 = arith.maximumf %23, %22 : vector<8x128xf32>
      %25 = vector.broadcast %cst_15 : f32 to vector<8x128xf32>
      %26 = arith.minimumf %25, %24 : vector<8x128xf32>
      %c0_16 = arith.constant 0 : index
      %c0_17 = arith.constant 0 : index
      %27 = vector.load %arg5[%c0_16, %c0_17] : memref<8x128xf32, #tpu.memory_space<vmem>>, vector<8x128xf32>
      tpu.vector_store %arg5[%c0_16, %c0_17], %26 {strides = array<i32>} : memref<8x128xf32, #tpu.memory_space<vmem>>, vector<8x128xf32>,
    } else {
    }
    return
  }
  func.func @transform_0(%arg0: i32, %arg1: i32, %arg2: i32) -> (i32, i32, i32) {
    %c0_i32 = arith.constant 0 : i32
    %c0_i32_0 = arith.constant 0 : i32
    %c0_i32_1 = arith.constant 0 : i32
    return %arg0, %c0_i32, %c0_i32_0 : i32, i32, i32
  }
  func.func @transform_1(%arg0: i32, %arg1: i32, %arg2: i32) -> (i32, i32, i32) {
    %c0_i32 = arith.constant 0 : i32
    return %arg0, %arg2, %arg1 : i32, i32, i32
  }
  func.func @transform_2(%arg0: i32, %arg1: i32, %arg2: i32) -> (i32, i32) {
    %c0_i32 = arith.constant 0 : i32
    return %arg0, %arg1 : i32, i32
  }
}

</mosaic_0001>

<bundles_post_ra>
// kernel: tpu_custom_call.1
= control target key start
LH: loop header
LB: loop body
LE: loop exit
PB: predicated region body
PF: predicated region fallthrough
CT: control target
= control target key end

     0   :  { %7 = vsyncpa [#allocation4], 0  ;;  %s1163_s0 = inlined_call_operand.vmem [shape: s32[8,1,1], index: 0, kind: input, shape index: {}]   ;;  %s1164_s1 = inlined_call_operand.hbm [shape: f32[8,48,256], index: 1, kind: input, shape index: {}]   ;;  %s1165_s2 = inlined_call_operand.hbm [shape: f32[8,256], index: 2, kind: output, shape index: {}]  }
   0x1   :  { %9 = vsyncpa [#allocation4 + $0x1], 0 }
   0x2   :  { %10 = vsyncpa [#allocation5], 0 }
   0x3   :  { %12 = vsyncpa [#allocation5 + $0x1], 0  ;;  %s918_s9 = smov 0   ;;  %s920_s10 = smov 0  }
   0x4   :  { %s922_s11 = smov 0   ;;  %s924_s12 = smov 0  }
   0x5   :  { %s926_s13 = smov 0   ;;  %s928_s14 = smov 0  }
   0x6   :  { %s930_s15 = smov 0   ;;  %s932_s16 = smov 0  }
   0x7   :  { %s934_s17 = smov 0   ;;  %s936_s18 = smov 0  }
   0x8   :  { %s938_s19 = smov 0  }
   0x9 LB: > { %1169 = sst [smem:[#allocation12_spill]] %s872_s14  ;;  %s626_s20 = sadd.s32 4294967295, %s892_s19   ;;  %s892_s19 = sphi %s938_s19, %s18_s19   ;;  %s888_s18 = sphi %s936_s18, %s1189_s18   ;;  %s884_s17 = sphi %s934_s17, %s1188_s17   ;;  %s880_s16 = sphi %s932_s16, %s1187_s16   ;;  %s876_s15 = sphi %s930_s15, %s1186_s15   ;;  %s872_s14 = sphi %s928_s14, %s1178_s14   ;;  %s868_s13 = sphi %s926_s13, %s1185_s13   ;;  %s864_s12 = sphi %s924_s12, %s1184_s12   ;;  %s860_s11 = sphi %s922_s11, %s1183_s11   ;;  %s856_s10 = sphi %s920_s10, %s1182_s10   ;;  %s852_s9 = sphi %s918_s9, %s1181_s9  }
   0xa   : > { %s627_s21 = sadd.s32 4294967294, %s892_s19   ;;  %s30_s22 = sadd.s32 1, %s884_s17 }
   0xb   : > { %s33_s23 = sadd.s32 1, %s888_s18  ;;  %p31_p0 = scmp.ge.s32.totalorder %s30_s22, 3 }
   0xc   : > { %s74_s24 = sadd.s32 1, %s872_s14  ;;  %p81_p1 = scmp.ne.s32.totalorder %s872_s14, %s868_s13 }
   0xd   : > { %p82_p2 = scmp.eq.s32.totalorder %s892_s19, 0  ;;  %s1191_s22 = smov (%p31_p0, %s30_s22), 0 }
   0xe   : > { %1170 = sst [smem:[#allocation13_spill]] %s1191_s22  ;;  %s1193_s23 = smov (!%p31_p0, %s33_s23), %s888_s18 }
   0xf   : > { %s68_s25 = ssub.s32 %s884_s17, %s1191_s22  ;;  %p984_p3 = por %p82_p2, %p81_p1 }
  0x10   : > { %p35_p4 = scmp.ge.s32.totalorder %s1193_s23, 2  ;;  %p87_p5 = scmp.ne.s32.totalorder %s868_s13, %s864_s12 }
  0x11   : > { %p88_p6 = scmp.eq.s32.totalorder %s626_s20, 0  ;;  %s102_s27 = sadd.s32 1, %s860_s11 }
  0x12   : > { %s1195_s23 = smov (%p35_p4, %s1193_s23), 0  ;;  %p112_p8 = scmp.ne.s32.totalorder %s860_s11, %s856_s10 }
  0x13   : > { %1172 = sst [smem:[#allocation14_spill]] %s1195_s23  ;;  %p992_p7 = por %p88_p6, %p87_p5 }
  0x14   : > { %s70_s29 = ssub.s32 %s888_s18, %s1195_s23  ;;  %p113_p9 = scmp.eq.s32.totalorder %s626_s20, 5 }
  0x15   : > { %s71_s30 = sor.u32 %s70_s29, %s68_s25  ;;  %p100_p10 = scmp.eq.s32.totalorder %s70_s29, 0 }
  0x16   : > { %p72_p11 = scmp.eq.s32.totalorder %s71_s30, 0  ;;  %p1000_p12 = por %p113_p9, %p112_p8 }
  0x17   : > { %s1005_s4 = scalar_select %p100_p10, %s860_s11, %s102_s27  }
  0x18   : > { %s1008_s5 = scalar_select %p72_p11, %s872_s14, %s74_s24  }
  0x19   : > { %p118_p13 = scmp.ne.s32.totalorder %s856_s10, %s852_s9  ;;  %p119_p0 = scmp.eq.s32.totalorder %s627_s21, 5 }
  0x1a   : > { %1175 = sst [smem:[#allocation15_spill]] %s1008_s5  ;;  %p630_p2 = scmp.ge.s32.totalorder %s892_s19, 6 }
  0x1b   : > { %p1012_p1 = por %p119_p0, %p118_p13 }
  0x1c   : > { %143 = sbr.rel (%p630_p2) target bundleno = 50 (0x32), region = 20 }
  0x23   : > { %s147_s7 = sand.u32 1, %s872_s14   ;;  %s655_s8 = sshll.u32 %s884_s17, 2 }
  0x24   : > { %s631_s12 = sshll.u32 %s147_s7, 7  ;;  %s158_s20 = sadd.s32 %s888_s18, %s655_s8 }
  0x25   : > { %s634_s21 = sshll.u32 %s158_s20, 7  ;;  %s151_s29 = scalar_lea.vmem [#allocation3], %s631_s12 }
  0x26   : > { %s162_s27 = scalar_lea.hbm %s1164_s1, %s634_s21  ;;  %s175_s30 = sshll.u32 %s151_s29, 4  ;;  %s176_s30 = int_to_ptr.vmem [resolvable:$true] %s175_s30 }
  0x27   : > { %s656_s23 = scalar_select %p984_p3, [#allocation0], [#allocation9] }
  0x28   : > { %s894_s5 = smov 1536   ;;  %s895_s14 = smov 256  }
  0x29   : > { %s167_s22 = sld [smem:[%s656_s23]]   ;;  %s896_s8 = smov 2  }
  0x2a   : > { %657 = sst [smem:[#allocation8]] (%p984_p3), %s894_s5  ;;  %s897_s20 = smov 128  }
  0x2b   : > { %658 = sst [smem:[#allocation8 + $0x1]] (%p984_p3), %s895_s14  ;;  %s898_s12 = smov 8  }
  0x2c   : > { %659 = sst [smem:[#allocation8 + $0x2]] (%p984_p3), %s896_s8  ;;  %s148_s24 = scalar_lea.sflag [#allocation4], %s147_s7 }
  0x2d   : > { %660 = sst [smem:[#allocation8 + $0x3]] (%p984_p3), %s895_s14  ;;  %s899_s25 = smov [#allocation7]  }
  0x2e   : > { %661 = sst [smem:[#allocation8 + $0x4]] (%p984_p3), %s897_s20 }
  0x2f   : > { %662 = sst [smem:[#allocation8 + $0x5]] (%p984_p3), %s898_s12  ;;  %s635_s23 = sshll.u32 %s167_s22, 26 }
  0x30   : > { %s636_s21 = sadd.s32 134217728, %s635_s23 }
  0x31   : > { %663 = dma.general (%p984_p3), %s162_s27, 2048, %s176_s30, %s148_s24, %s899_s25, [#allocation8], %s636_s21, 0  }
  0x32 PF: > { %p637_p4 = scmp.ge.s32.totalorder %s892_s19, 1  ;;  %p196_p5 = scmp.lt.s32.totalorder %s892_s19, 7 }
  0x34   : > { %p197_p6 = pnand %p637_p4, %p196_p5 }
  0x35   : > { %s202_s14 = sand.u32 (!%p197_p6), 1, %s868_s13  }
  0x36   : > { %200 = sbr.rel (%p197_p6) target bundleno = 291 (0x123), region = 28  ;;  %s638_s5 = sshll.u32 (!%p197_p6), %s202_s14, 7 }
  0x37   : > { %s203_s29 = scalar_lea.sflag (!%p197_p6), [#allocation4], %s202_s14  ;;  %s1042_s8 = scalar_lea.vmem (!%p197_p6), [#allocation3], %s638_s5 }
  0x3d   : > { %843 = dma.done.wait (%p992_p7), %s203_s29, 2048  }
  0x3e   : > { %845 = vsyncadd (%p992_p7), %s203_s29, 4294965248  ;;  %s228_s22 = sand.u32 1, %s856_s10   ;;  %p640_p3 = scmp.ne.s32.totalorder %s876_s15, 0 }
  0x3f   : > { %s1051_s26 = sshll.u32 %s228_s22, 3  ;;  %v900_v0 = vmov (!%p640_p3), inf  }
  0x40   : > { %s230_s7 = scalar_lea.vmem [#allocation6], %s1051_s26  ;;  %241 = sbr.rel (%p640_p3) target bundleno = 71 (0x47), region = 36  ;;  %242 = vst [vmem:[#allocation2] sm:$0xff] (!%p640_p3), %v900_v0 }
  0x47 PF: > { %s641_s27 = sshll.u32 %s876_s15, 4  ;;  %v260_v1 = vlaneseq  ;;  %v901_v2 = vmov 0   ;;  %v643_v5 = vld [vmem:[%s1163_s0 + $0x1] ss:$0 sm:$0xff]  ;;  %v642_v6 = vld [vmem:[%s1163_s0] ss:$0 sm:$0xff] }
  0x48   : > { %769 = vset.pattern.permute.xlu1 %v901_v2  ;;  %768 = vset.pattern.permute.xlu0 %v901_v2  ;;  %v263_v3 = vstv %s641_s27  ;;  %v644_v7 = vld [vmem:[%s1163_s0 + $0x2] ss:$0 sm:$0xff]  ;;  %v645_v15 = vld [vmem:[%s1163_s0 + $0x3] ss:$0 sm:$0xff]  ;;  %v646_v18 = vld [vmem:[%s1163_s0 + $0x4] ss:$0 sm:$0xff] }
  0x49   : > { %v261_v4 = vshrl.u32 %v260_v1, 7  ;;  %v647_v21 = vld [vmem:[%s1163_s0 + $0x5] ss:$0 sm:$0xff]  ;;  %v648_v24 = vld [vmem:[%s1163_s0 + $0x6] ss:$0 sm:$0xff]  ;;  %v243_v37 = vld [vmem:[%s1042_s8] sm:$0xff] }
  0x4a   : > { %v649_v27 = vld [vmem:[%s1163_s0 + $0x7] ss:$0 sm:$0xff]  ;;  %v248_v38 = vld [vmem:[%s1042_s8 + $0x28] sm:$0xff]  ;;  %v245_v40 = vld [vmem:[%s1042_s8 + $0x10] sm:$0xff]  ;;  %p650_p7 = scmp.ne.s32.totalorder %s876_s15, 2 }
  0x4b   : > { %v264_v8 = vadd.s32 %v263_v3, %v261_v4  ;;  %v262_v9 = vadd.s32 8, %v261_v4  ;;  %v246_v36 = vld [vmem:[%s1042_s8 + $0x18] sm:$0xff]  ;;  %v244_v39 = vld [vmem:[%s1042_s8 + $0x8] sm:$0xff]  ;;  %v247_v44 = vld [vmem:[%s1042_s8 + $0x20] sm:$0xff] }
  0x4c   : > { %v250_v50 = vld [vmem:[%s1042_s8 + $0x38] sm:$0xff]  ;;  %v249_v55 = vld [vmem:[%s1042_s8 + $0x30] sm:$0xff]  ;;  %v252_v60 = vld [vmem:[%s1042_s8 + $0x48] sm:$0xff] }
  0x4d   : > { %vm308_vm0 = vcmp.lt.s32.totalorder %v264_v8, %v643_v5  ;;  %vm306_vm1 = vcmp.lt.s32.totalorder %v264_v8, %v642_v6  ;;  %v265_v10 = vadd.s32 %v263_v3, %v262_v9  ;;  %vm310_vm2 = vcmp.lt.s32.totalorder %v264_v8, %v644_v7  ;;  %v251_v1 = vld [vmem:[%s1042_s8 + $0x40] sm:$0xff] }
  0x4e   : > { %v324_v11 = vsel %vm308_vm0, 1, %v901_v2  ;;  %v322_v12 = vsel %vm306_vm1, 1, %v901_v2  ;;  %v326_v14 = vsel %vm310_vm2, 1, %v901_v2  ;;  %vm312_vm7 = vcmp.lt.s32.totalorder %v264_v8, %v645_v15 }
  0x4f   : > { %345 = vperm.xlu1 %769, %v324_v11   ;;  %339 = vperm.xlu0 %768, %v322_v12   ;;  %vm309_vm3 = vcmp.lt.s32.totalorder %v265_v10, %v643_v5  ;;  %vm311_vm4 = vcmp.lt.s32.totalorder %v265_v10, %v644_v7  ;;  %vm307_vm5 = vcmp.lt.s32.totalorder %v265_v10, %v642_v6  ;;  %v328_v20 = vsel %vm312_vm7, 1, %v901_v2  ;;  %v254_v7 = vld [vmem:[%s1042_s8 + $0x58] sm:$0xff] }
  0x50   : > { %v325_v13 = vsel %vm309_vm3, 1, %v901_v2  ;;  %v327_v16 = vsel %vm311_vm4, 1, %v901_v2  ;;  %v323_v17 = vsel %vm307_vm5, 1, %v901_v2  ;;  %vm313_vm6 = vcmp.lt.s32.totalorder %v265_v10, %v645_v15 }
  0x51   : > { %v329_v19 = vsel %vm313_vm6, 1, %v901_v2  ;;  %vm315_vm8 = vcmp.lt.s32.totalorder %v265_v10, %v646_v18  ;;  %vm314_vm9 = vcmp.lt.s32.totalorder %v264_v8, %v646_v18  ;;  %vm317_vm10 = vcmp.lt.s32.totalorder %v265_v10, %v647_v21 }
  0x52   : > { %v331_v22 = vsel %vm315_vm8, 1, %v901_v2  ;;  %v330_v23 = vsel %vm314_vm9, 1, %v901_v2  ;;  %vm316_vm11 = vcmp.lt.s32.totalorder %v264_v8, %v647_v21  ;;  %v333_v25 = vsel %vm317_vm10, 1, %v901_v2 }
  0x53   : > { %348 = vperm.xlu1 %769, %v325_v13   ;;  %351 = vperm.xlu0 %768, %v326_v14   ;;  %v332_v26 = vsel %vm316_vm11, 1, %v901_v2  ;;  %vm319_vm12 = vcmp.lt.s32.totalorder %v265_v10, %v648_v24  ;;  %vm318_vm13 = vcmp.lt.s32.totalorder %v264_v8, %v648_v24  ;;  %vm321_vm14 = vcmp.lt.s32.totalorder %v265_v10, %v649_v27 }
  0x54   : > { %v335_v28 = vsel %vm319_vm12, 1, %v901_v2  ;;  %v334_v29 = vsel %vm318_vm13, 1, %v901_v2  ;;  %vm320_vm15 = vcmp.lt.s32.totalorder %v264_v8, %v649_v27  ;;  %v337_v30 = vsel %vm321_vm14, 1, %v901_v2  ;;  %v253_v8 = vld [vmem:[%s1042_s8 + $0x50] sm:$0xff] }
  0x55   : > { %v336_v31 = vsel %vm320_vm15, 1, %v901_v2 }
  0x57   : > { %354 = vperm.xlu1 %769, %v327_v16   ;;  %342 = vperm.xlu0 %768, %v323_v17  }
  0x5b   : > { %360 = vperm.xlu1 %769, %v329_v19   ;;  %357 = vperm.xlu0 %768, %v328_v20   ;;  %v256_v20 = vld [vmem:[%s1042_s8 + $0x68] sm:$0xff] }
  0x5f   : > { %366 = vperm.xlu1 %769, %v331_v22   ;;  %363 = vperm.xlu0 %768, %v330_v23  }
  0x63   : > { %372 = vperm.xlu1 %769, %v333_v25   ;;  %369 = vperm.xlu0 %768, %v332_v26   ;;  %v255_v25 = vld [vmem:[%s1042_s8 + $0x60] sm:$0xff] }
  0x67   : > { %378 = vperm.xlu1 %769, %v335_v28   ;;  %375 = vperm.xlu0 %768, %v334_v29  }
  0x6b   : > { %384 = vperm.xlu1 %769, %v337_v30   ;;  %381 = vperm.xlu0 %768, %v336_v31  }
  0xce   : > { %v346_v32 = vpop.permute.xlu1 %345  ;;  %v340_v33 = vpop.permute.xlu0 %339 }
  0xcf   : > { %vm386_vm1 = vcmp.eq.s32.totalorder %v340_v33, 1  ;;  %vm388_vm2 = vcmp.eq.s32.totalorder %v346_v32, 1 }
  0xd0   : > { %v402_v45 = vsel %vm386_vm1, %v243_v37, inf  ;;  %v404_v48 = vsel %vm388_vm2, %v245_v40, inf  ;;  %vm485_vm1 = vcmask 1042434   ;;  %vm487_vm2 = vcmask 1043459  }
  0xd2   : > { %v349_v34 = vpop.permute.xlu1 %348  ;;  %v352_v35 = vpop.permute.xlu0 %351 }
  0xd3   : > { %vm389_vm0 = vcmp.eq.s32.totalorder %v349_v34, 1  ;;  %vm390_vm3 = vcmp.eq.s32.totalorder %v352_v35, 1  ;;  %v258_v34 = vld [vmem:[%s1042_s8 + $0x78] sm:$0xff] }
  0xd4   : > { %v405_v43 = vsel %vm389_vm0, %v246_v36, inf  ;;  %v406_v52 = vsel %vm390_vm3, %v247_v44, inf  ;;  %vm483_vm0 = vcmask 1041409   ;;  %vm489_vm3 = vcmask 1044484  }
  0xd5   : > { %v426_v51 = vmin.f32 %v404_v48, %v405_v43 }
  0xd6   : > { %v355_v41 = vpop.permute.xlu1 %354  ;;  %v343_v42 = vpop.permute.xlu0 %342 }
  0xd7   : > { %vm391_vm4 = vcmp.eq.s32.totalorder %v355_v41, 1  ;;  %vm387_vm5 = vcmp.eq.s32.totalorder %v343_v42, 1  ;;  %v427_v61 = vrot.slane %v426_v51, 4 }
  0xd8   : > { %v407_v46 = vsel %vm391_vm4, %v248_v38, inf  ;;  %v403_v47 = vsel %vm387_vm5, %v244_v39, inf  ;;  %v257_v39 = vld [vmem:[%s1042_s8 + $0x70] sm:$0xff]  ;;  %vm491_vm4 = vcmask 1045509   ;;  %vm493_vm5 = vcmask 1046534  }
  0xd9   : > { %v419_v49 = vmin.f32 %v402_v45, %v403_v47  ;;  %v433_v56 = vmin.f32 %v406_v52, %v407_v46  ;;  %v428_v9 = vmin.f32 %v426_v51, %v427_v61 }
  0xda   : > { %v361_v53 = vpop.permute.xlu1 %360  ;;  %v358_v54 = vpop.permute.xlu0 %357 }
  0xdb   : > { %v420_v57 = vrot.slane %v419_v49, 4  ;;  %vm393_vm6 = vcmp.eq.s32.totalorder %v361_v53, 1  ;;  %vm392_vm7 = vcmp.eq.s32.totalorder %v358_v54, 1  ;;  %v434_v2 = vrot.slane %v433_v56, 4 }
  0xdc   : > { %v409_v58 = vsel %vm393_vm6, %v250_v50, inf  ;;  %v408_v59 = vsel %vm392_vm7, %v249_v55, inf  ;;  %v429_v21 = vrot.slane %v428_v9, 2  ;;  %vm495_vm6 = vcmask 1047559  }
  0xdd   : > { %v440_v62 = vmin.f32 %v408_v59, %v409_v58  ;;  %v421_v3 = vmin.f32 %v419_v49, %v420_v57  ;;  %v435_v13 = vmin.f32 %v433_v56, %v434_v2 }
  0xde   : > { %v367_v63 = vpop.permute.xlu1 %366  ;;  %v364_v0 = vpop.permute.xlu0 %363  ;;  %v430_v35 = vmin.f32 %v428_v9, %v429_v21 }
  0xdf   : > { %vm395_vm8 = vcmp.eq.s32.totalorder %v367_v63, 1  ;;  %v441_v4 = vrot.slane %v440_v62, 4  ;;  %vm394_vm9 = vcmp.eq.s32.totalorder %v364_v0, 1  ;;  %v422_v14 = vrot.slane %v421_v3, 2 }
  0xe0   : > { %v411_v5 = vsel %vm395_vm8, %v252_v60, inf  ;;  %v410_v6 = vsel %vm394_vm9, %v251_v1, inf  ;;  %v436_v26 = vrot.slane %v435_v13, 2  ;;  %v431_v48 = vrot.slane %v430_v35, 1 }
  0xe1   : > { %v447_v10 = vmin.f32 %v410_v6, %v411_v5  ;;  %v442_v15 = vmin.f32 %v440_v62, %v441_v4  ;;  %v423_v28 = vmin.f32 %v421_v3, %v422_v14 }
  0xe2   : > { %v373_v11 = vpop.permute.xlu1 %372  ;;  %v370_v12 = vpop.permute.xlu0 %369  ;;  %v437_v40 = vmin.f32 %v435_v13, %v436_v26  ;;  %v432_v58 = vmin.f32 %v430_v35, %v431_v48 }
  0xe3   : > { %vm397_vm10 = vcmp.eq.s32.totalorder %v373_v11, 1  ;;  %vm396_vm11 = vcmp.eq.s32.totalorder %v370_v12, 1  ;;  %v448_v16 = vrot.slane %v447_v10, 4  ;;  %v443_v29 = vrot.slane %v442_v15, 2  ;;  %v418_v12 = vld [vmem:[#allocation2] sm:$0xff] }
  0xe4   : > { %v413_v17 = vsel %vm397_vm10, %v254_v7, inf  ;;  %v412_v18 = vsel %vm396_vm11, %v253_v8, inf  ;;  %v424_v42 = vrot.slane %v423_v28, 1  ;;  %v438_v52 = vrot.slane %v437_v40, 1 }
  0xe5   : > { %v454_v19 = vmin.f32 %v412_v18, %v413_v17  ;;  %v449_v22 = vmin.f32 %v447_v10, %v448_v16  ;;  %v444_v43 = vmin.f32 %v442_v15, %v443_v29 }
  0xe6   : > { %v379_v23 = vpop.permute.xlu1 %378  ;;  %v376_v24 = vpop.permute.xlu0 %375  ;;  %v425_v53 = vmin.f32 %v423_v28, %v424_v42  ;;  %v439_v62 = vmin.f32 %v437_v40, %v438_v52 }
  0xe7   : > { %v455_v27 = vrot.slane %v454_v19, 4  ;;  %vm399_vm12 = vcmp.eq.s32.totalorder %v379_v23, 1  ;;  %vm398_vm13 = vcmp.eq.s32.totalorder %v376_v24, 1  ;;  %v450_v31 = vrot.slane %v449_v22, 2 }
  0xe8   : > { %v415_v30 = vsel %vm399_vm12, %v256_v20, inf  ;;  %v414_v33 = vsel %vm398_vm13, %v255_v25, inf  ;;  %v445_v54 = vrot.slane %v444_v43, 1  ;;  %v484_v63 = vsel %vm483_vm0, %v432_v58, %v425_v53 }
  0xe9   : > { %v456_v32 = vmin.f32 %v454_v19, %v455_v27  ;;  %v461_v36 = vmin.f32 %v414_v33, %v415_v30  ;;  %v451_v46 = vmin.f32 %v449_v22, %v450_v31  ;;  %v486_v6 = vsel %vm485_vm1, %v439_v62, %v484_v63 }
  0xea   : > { %v385_v37 = vpop.permute.xlu1 %384  ;;  %v382_v38 = vpop.permute.xlu0 %381  ;;  %v446_v0 = vmin.f32 %v444_v43, %v445_v54 }
  0xeb   : > { %v457_v41 = vrot.slane %v456_v32, 2  ;;  %vm401_vm14 = vcmp.eq.s32.totalorder %v385_v37, 1  ;;  %vm400_vm15 = vcmp.eq.s32.totalorder %v382_v38, 1  ;;  %v462_v44 = vrot.slane %v461_v36, 4 }
  0xec   : > { %v417_v45 = vsel %vm401_vm14, %v258_v34, inf  ;;  %v416_v47 = vsel %vm400_vm15, %v257_v39, inf  ;;  %v452_v57 = vrot.slane %v451_v46, 1  ;;  %v488_v8 = vsel %vm487_vm2, %v446_v0, %v486_v6 }
  0xed   : > { %v458_v49 = vmin.f32 %v456_v32, %v457_v41  ;;  %v463_v50 = vmin.f32 %v461_v36, %v462_v44  ;;  %v468_v51 = vmin.f32 %v416_v47, %v417_v45 }
  0xee   : > { %v453_v3 = vmin.f32 %v451_v46, %v452_v57 }
  0xef   : > { %v464_v55 = vrot.slane %v463_v50, 2  ;;  %v469_v56 = vrot.slane %v468_v51, 4  ;;  %v459_v59 = vrot.slane %v458_v49, 1 }
  0xf0   : > { %v490_v10 = vsel %vm489_vm3, %v453_v3, %v488_v8 }
  0xf1   : > { %v465_v60 = vmin.f32 %v463_v50, %v464_v55  ;;  %v470_v61 = vmin.f32 %v468_v51, %v469_v56  ;;  %v460_v4 = vmin.f32 %v458_v49, %v459_v59 }
  0xf3   : > { %v466_v1 = vrot.slane %v465_v60, 1  ;;  %v471_v2 = vrot.slane %v470_v61, 2  ;;  %v492_v11 = vsel %vm491_vm4, %v460_v4, %v490_v10 }
  0xf5   : > { %v472_v5 = vmin.f32 %v470_v61, %v471_v2  ;;  %v467_v7 = vmin.f32 %v465_v60, %v466_v1 }
  0xf7   : > { %v473_v9 = vrot.slane %v472_v5, 1  ;;  %v494_v14 = vsel %vm493_vm5, %v467_v7, %v492_v11 }
  0xf8   : > { %503 = sbr.rel (%p650_p7) target bundleno = 267 (0x10b), region = 40 }
  0xf9   : > { %v474_v13 = vmin.f32 %v472_v5, %v473_v9 }
  0xfb   : > { %v496_v15 = vsel %vm495_vm6, %v474_v13, %v494_v14 }
  0xfc   : > { %v498_v16 = vmin.f32 %v418_v12, %v496_v15 }
  0xfe   : > { %499 = vst [vmem:[#allocation2] sm:$0xff] %v498_v16 }
 0x105   : > { %v504_v17 = vld [vmem:[#allocation2] sm:$0xff] }
 0x106   : > { %v505_v18 = vmax.f32 %v504_v17, 1e-09 }
 0x108   : > { %v506_v19 = vmin.f32 %v505_v18, 1e+09 }
 0x10a   : > { %507 = vst [vmem:[%s230_s7] sm:$0xff] %v506_v19 }
 0x10b PF: > { %s652_s8 = sshll.u32 %s880_s16, 7  ;;  %s524_s15 = sshll.u32 %s230_s7, 4  ;;  %s525_s15 = int_to_ptr.vmem [resolvable:$true] %s524_s15 }
 0x10c   : > { %s1103_s24 = scalar_lea.hbm %s1165_s2, %s652_s8  ;;  %s509_s25 = scalar_lea.sflag [#allocation5], %s228_s22 }
 0x10d   : > { %s770_s14 = scalar_lea.vmem %s525_s15, 128  ;;  %s902_s5 = smov [#allocation6]  }
 0x10e   : > { %p771_p8 = scmp.ne.s32.totalorder %s525_s15, %s770_s14  ;;  %s774_s29 = sshll.u32 %s902_s5, 4  ;;  %s775_s29 = int_to_ptr.vmem [resolvable:$false] %s774_s29 }
 0x10f   : > { %s776_s27 = scalar_lea.vmem %s775_s29, 256  ;;  %p777_p11 = scmp.lt.s32.totalorder %s525_s15, %s775_s29 }
 0x110   : > { %p772_p9 = pnand %p771_p8, %p1000_p12  ;;  %p778_p13 = scmp.lt.s32.totalorder %s776_s27, %s770_s14 }
 0x112   : > { %p773_p10 = pneg %p772_p9  ;;  %p779_p0 = por %p778_p13, %p777_p11 }
 0x114   : > { %p780_p2 = pnand %p779_p0, %p773_p10 }
 0x116   : > { %783 = shalt.err (!%p780_p2)
}
 0x117   : > { %s784_s16 = scalar_lea.hbm %s1103_s24, 128  ;;  %s788_s7 = scalar_lea.hbm %s1165_s2, 256 }
 0x118   : > { %p785_p4 = scmp.ne.s32.totalorder %s1103_s24, %s784_s16  ;;  %p789_p3 = scmp.lt.u32.totalorder %s1103_s24, %s1165_s2 }
 0x119   : > { %p790_p7 = scmp.lt.u32.totalorder %s788_s7, %s784_s16  ;;  %p792_p9 = scmp.lt.u32.totalorder %s784_s16, %s1103_s24 }
 0x11a   : > { %p786_p5 = pnand %p785_p4, %p1000_p12 }
 0x11b   : > { %p791_p8 = por %p790_p7, %p789_p3 }
 0x11c   : > { %p787_p6 = pneg %p786_p5 }
 0x11d   : > { %p793_p10 = por %p792_p9, %p791_p8 }
 0x11f   : > { %p794_p11 = pnand %p793_p10, %p787_p6 }
 0x121   : > { %797 = shalt.err (!%p794_p11)
}
 0x122   : > { %665 = dma.vmem_to_hbm [thread:$0]  (%p1000_p12), %s525_s15, 128, %s1103_s24, %s509_s25  }
 0x123 PF: > { %p671_p13 = scmp.ge.s32.totalorder %s892_s19, 2  ;;  %s536_s20 = sand.u32 1, %s852_s9  }
 0x124   : > { %s537_s12 = scalar_lea.sflag [#allocation5], %s536_s20 }
 0x125   : > { %p668_p0 = pnand %p671_p13, %p1012_p1 }
 0x127   : > { %847 = dma.done.wait (!%p668_p0), %s537_s12, 128  }
 0x128   : > { %849 = vsyncadd (!%p668_p0), %s537_s12, 4294967168  ;;  %s18_s19 = sadd.s32 1, %s892_s19   ;;  %s1177_s3 = sld [smem:[#allocation12_spill]] }
 0x129   : > { %p15_p2 = scmp.ge.s32.totalorder %s18_s19, 8   ;;  %s1178_s14 = sld [smem:[#allocation15_spill]] }
 0x12a   : > { %s1179_s8 = sld [smem:[#allocation13_spill]]  ;;  %s1180_s23 = sld [smem:[#allocation14_spill]] }
 0x12b   : > { %s1181_s9 = smov %s856_s10  ;;  %s1182_s10 = smov %s860_s11 }
 0x12c   : > { %s1183_s11 = smov %s1005_s4  ;;  %s1184_s12 = smov %s868_s13 }
 0x12d   : > { %s1186_s15 = smov %s884_s17  ;;  %s1187_s16 = smov %s888_s18 }
 0x12e   : > { %s1185_s13 = smov %s1177_s3  ;;  %17 = sbr.rel (!%p15_p2) target bundleno = 9 (0x9), region = 89 }
 0x130   : > { %s1188_s17 = smov %s1179_s8  ;;  %s1189_s18 = smov %s1180_s23 }
 0x135   :  { %542 = vsyncpa [#allocation4], 1 }
 0x136   :  { %544 = vsyncpa [#allocation4 + $0x1], 1 }
 0x137   :  { %545 = vsyncpa [#allocation5], 1 }
 0x138   :  { %547 = vsyncpa [#allocation5 + $0x1], 1 }

</bundles_post_ra>
